<compile_context>
chip_gen: v6e
topology: v6e:2x2x1
jax: 0.10.0
libtpu: 0.0.40
codegen_flags: <defaults>
</compile_context>

<pallas_src>
import functools

import jax
import jax.numpy as jnp
from jax.experimental import pallas as pl
from jax.experimental.pallas import tpu as pltpu


def _loss_kernel(sa1_ref, sa2_ref, sb1_ref, sb2_ref, out_ref, acc_ref, *,
                 margin, col, n_total, tile_n, steps_per_part, needs_mask):
    j = pl.program_id(1)

    @pl.when(j == 0)
    def _():
        acc_ref[...] = jnp.zeros_like(acc_ref)

    # Static column slice (center channel within the fetched lane block);
    # cast the 1-column slabs to f32 in-kernel (inputs arrive in native dtype).
    a1 = sa1_ref[:, col:col + 1].astype(jnp.float32)
    a2 = sa2_ref[:, col:col + 1].astype(jnp.float32)
    b1 = sb1_ref[:, col:col + 1].astype(jnp.float32)
    b2 = sb2_ref[:, col:col + 1].astype(jnp.float32)

    diff_prod = (a1 - a2) * (b1 - b2)                               # (tile_n, 1)
    loss = jnp.maximum(jnp.float32(margin) - diff_prod, jnp.float32(0.0))

    if needs_mask:
        # Logical (unclamped) tile index; tiles past N are fully masked out,
        # the ragged last tile is partially masked.  Only edge tiles pay the
        # iota/compare/select; interior tiles take the plain-sum path.
        p = pl.program_id(0)
        tile_start = (p * steps_per_part + j) * tile_n
        is_edge = (tile_start + tile_n) > n_total

        @pl.when(is_edge)
        def _():
            row = jax.lax.broadcasted_iota(jnp.int32, (tile_n, 1), 0)
            valid = (tile_start + row) < n_total
            acc_ref[...] += jnp.sum(jnp.where(valid, loss, jnp.float32(0.0)),
                                    keepdims=True)

        @pl.when(jnp.logical_not(is_edge))
        def _():
            acc_ref[...] += jnp.sum(loss, keepdims=True)
    else:
        acc_ref[...] += jnp.sum(loss, keepdims=True)                # (1, 1)

    @pl.when(j == pl.num_programs(1) - 1)
    def _():
        # Per-part partial sum, broadcast into this part's (8,128) out block.
        out_ref[...] = jnp.broadcast_to(acc_ref[...], out_ref.shape)


def loss_function(sa1, sa2, sb1, sb2, *, margin=1.0, tile_n=None,
                  vmem_budget_bytes=16 * 1024 * 1024):
    """Pallas TPU implementation of LossFunction.forward (peakedness_weight=0)."""
    assert sa1.shape == sa2.shape == sb1.shape == sb2.shape
    assert sa1.ndim == 2, "expected (N, C) score tensors"
    N, C = sa1.shape
    c = C // 2

    itemsize = jnp.dtype(sa1.dtype).itemsize
    # Native sublane pack: 8 rows (f32), 16 (bf16), 32 (int8/fp8).
    pack = max(8, 32 // itemsize)

    # Only fetch the 128-lane chunk containing the center channel whenever
    # C >= 128 (the block [128*(c//128), +128) is always fully in bounds for
    # c = C//2); fall back to the full row only for C < 128.
    if C >= 128:
        cb = 128
        col_block = c // 128
        col = c % 128
    else:
        cb = C
        col_block = 0
        col = c

    # N tiling: derive tile_n from the VMEM budget for the 4 double-buffered
    # input streams (4 tensors x 2 buffers x tile_n x cb x itemsize), round to
    # the dtype's sublane pack, cap to N.
    if tile_n is None:
        tile_n = vmem_budget_bytes // (4 * 2 * cb * itemsize)
        tile_n = min(int(tile_n), 32768)
    tile_n = min(int(tile_n), N)
    if tile_n < N:
        tile_n = max(pack, (tile_n // pack) * pack)
    grid_n = pl.cdiv(N, tile_n)

    # Megacore / 2-TC split of the N axis (per-part partial sums).  Harmless
    # (sequential) on 1-TC chips; up to ~2x on v7x.
    num_parts = 2 if grid_n >= 2 else 1
    steps_per_part = pl.cdiv(grid_n, num_parts)
    needs_mask = (num_parts * steps_per_part * tile_n) != N

    kernel = functools.partial(
        _loss_kernel, margin=float(margin), col=col, n_total=N,
        tile_n=tile_n, steps_per_part=steps_per_part, needs_mask=needs_mask)

    def in_index(p, j):
        # Clamp logical tile index so fully-out-of-range tiles (odd tile
        # counts) re-read the last valid block instead of issuing OOB DMA;
        # the in-kernel mask zeroes their contribution.
        t = jnp.minimum(p * steps_per_part + j, grid_n - 1)
        return (t, col_block)

    in_spec = pl.BlockSpec((tile_n, cb), in_index)
    out_spec = pl.BlockSpec((8, 128), lambda p, j: (p, 0))

    total_tiles = num_parts * steps_per_part
    input_bytes = 4 * 2 * tile_n * cb * itemsize        # double-buffered inputs
    vmem_limit = max(4 * 1024 * 1024,
                     min(48 * 1024 * 1024, input_bytes + 2 * 1024 * 1024))
    cost = pl.CostEstimate(
        flops=8 * N, transcendentals=0,
        bytes_accessed=4 * total_tiles * tile_n * cb * itemsize
                       + num_parts * 8 * 128 * 4)

    out = pl.pallas_call(
        kernel,
        out_shape=jax.ShapeDtypeStruct((num_parts * 8, 128), jnp.float32),
        grid=(num_parts, steps_per_part),
        in_specs=[in_spec, in_spec, in_spec, in_spec],
        out_specs=out_spec,
        scratch_shapes=[pltpu.VMEM((1, 1), jnp.float32)],
        compiler_params=pltpu.CompilerParams(
            dimension_semantics=("parallel", "arbitrary"),
            vmem_limit_bytes=int(vmem_limit)),
        cost_estimate=cost,
    )(sa1, sa2, sb1, sb2)

    partials = out.reshape(num_parts, 8, 128)[:, 0, 0]   # per-part sums
    return jnp.sum(partials) * jnp.float32(1.0 / N)


def _reference(sa1, sa2, sb1, sb2, margin=1.0):
    c = sa1.shape[1] // 2
    diff_a = sa1[:, c].astype(jnp.float32) - sa2[:, c].astype(jnp.float32)
    diff_b = sb1[:, c].astype(jnp.float32) - sb2[:, c].astype(jnp.float32)
    return jnp.mean(jnp.clip(margin - diff_a * diff_b, 0.0, None))


if __name__ == "__main__":
    # Case 1: small shapes (batch=8, channels=32) — single tile, full-C block.
    k1, k2, k3, k4 = jax.random.split(jax.random.PRNGKey(0), 4)
    N, C = 8, 32
    sa1 = jax.random.normal(k1, (N, C), dtype=jnp.float32)
    sa2 = jax.random.normal(k2, (N, C), dtype=jnp.float32)
    sb1 = jax.random.normal(k3, (N, C), dtype=jnp.float32)
    sb2 = jax.random.normal(k4, (N, C), dtype=jnp.float32)

    loss = jax.block_until_ready(loss_function(sa1, sa2, sb1, sb2, margin=1.0))
    ref = jax.block_until_ready(_reference(sa1, sa2, sb1, sb2, margin=1.0))
    assert jnp.allclose(loss, ref, atol=1e-5, rtol=1e-5), (loss, ref)

    # Case 2: C multiple of 128 (128-lane chunk) + 2-part split + ragged tile.
    k5, k6, k7, k8 = jax.random.split(jax.random.PRNGKey(1), 4)
    N2, C2 = 24, 256
    ta1 = jax.random.normal(k5, (N2, C2), dtype=jnp.float32)
    ta2 = jax.random.normal(k6, (N2, C2), dtype=jnp.float32)
    tb1 = jax.random.normal(k7, (N2, C2), dtype=jnp.float32)
    tb2 = jax.random.normal(k8, (N2, C2), dtype=jnp.float32)

    loss2 = jax.block_until_ready(
        loss_function(ta1, ta2, tb1, tb2, margin=1.0, tile_n=16))
    ref2 = jax.block_until_ready(_reference(ta1, ta2, tb1, tb2, margin=1.0))
    assert jnp.allclose(loss2, ref2, atol=1e-5, rtol=1e-5), (loss2, ref2)

    # Case 3: C not a multiple of 128 (new 128-lane fallback), odd tile count
    # (clamped + fully-masked trailing tile) and ragged last tile.
    k9, k10, k11, k12 = jax.random.split(jax.random.PRNGKey(2), 4)
    N3, C3 = 40, 200
    ua1 = jax.random.normal(k9, (N3, C3), dtype=jnp.float32)
    ua2 = jax.random.normal(k10, (N3, C3), dtype=jnp.float32)
    ub1 = jax.random.normal(k11, (N3, C3), dtype=jnp.float32)
    ub2 = jax.random.normal(k12, (N3, C3), dtype=jnp.float32)

    loss3 = jax.block_until_ready(
        loss_function(ua1, ua2, ub1, ub2, margin=1.0, tile_n=16))
    ref3 = jax.block_until_ready(_reference(ua1, ua2, ub1, ub2, margin=1.0))
    assert jnp.allclose(loss3, ref3, atol=1e-5, rtol=1e-5), (loss3, ref3)

    print("KERNEL_OK")
</pallas_src>

<mosaic_0001>
module attributes {stable_mosaic.version = 11 : i64} {
  func.func @_loss_kernel(%arg0: i32, %arg1: i32, %arg2: memref<8x32xf32, #tpu.memory_space<vmem>>, %arg3: memref<8x32xf32, #tpu.memory_space<vmem>>, %arg4: memref<8x32xf32, #tpu.memory_space<vmem>>, %arg5: memref<8x32xf32, #tpu.memory_space<vmem>>, %arg6: memref<8x128xf32, #tpu.memory_space<vmem>>, %arg7: memref<1x1xf32, #tpu.memory_space<vmem>>) attributes {dimension_semantics = [#tpu.dimension_semantics<parallel>, #tpu.dimension_semantics<arbitrary>], iteration_bounds = array<i64: 1, 1>, scalar_prefetch = 0 : i64, scratch_operands = 1 : i64, tpu.core_type = #tpu.core_type<tc>, window_params = [{transform_indices = @transform_0, window_bounds = array<i64: 8, 32>}, {transform_indices = @transform_1, window_bounds = array<i64: 8, 32>}, {transform_indices = @transform_2, window_bounds = array<i64: 8, 32>}, {transform_indices = @transform_3, window_bounds = array<i64: 8, 32>}, {transform_indices = @transform_4, window_bounds = array<i64: 8, 128>}]} {
    %c0_i32 = arith.constant 0 : i32
    %0 = arith.cmpi eq, %arg1, %c0_i32 : i32
    %1 = arith.extui %0 : i1 to i32
    %c0_i32_0 = arith.constant 0 : i32
    %2 = arith.cmpi ne, %1, %c0_i32_0 : i32
    scf.if %2 {
      %cst_15 = arith.constant 0.000000e+00 : f32
      %25 = vector.broadcast %cst_15 : f32 to vector<1x1xf32>
      %c0_16 = arith.constant 0 : index
      %c0_17 = arith.constant 0 : index
      %26 = vector.load %arg7[%c0_16, %c0_17] : memref<1x1xf32, #tpu.memory_space<vmem>>, vector<1x1xf32>
      tpu.vector_store %arg7[%c0_16, %c0_17], %25 {strides = array<i32>} : memref<1x1xf32, #tpu.memory_space<vmem>>, vector<1x1xf32>,
    } else {
    }
    %c0 = arith.constant 0 : index
    %c16 = arith.constant 16 : index
    %3 = vector.load %arg2[%c0, %c16] : memref<8x32xf32, #tpu.memory_space<vmem>>, vector<8x1xf32>
    %c0_1 = arith.constant 0 : index
    %c16_2 = arith.constant 16 : index
    %4 = vector.load %arg3[%c0_1, %c16_2] : memref<8x32xf32, #tpu.memory_space<vmem>>, vector<8x1xf32>
    %c0_3 = arith.constant 0 : index
    %c16_4 = arith.constant 16 : index
    %5 = vector.load %arg4[%c0_3, %c16_4] : memref<8x32xf32, #tpu.memory_space<vmem>>, vector<8x1xf32>
    %c0_5 = arith.constant 0 : index
    %c16_6 = arith.constant 16 : index
    %6 = vector.load %arg5[%c0_5, %c16_6] : memref<8x32xf32, #tpu.memory_space<vmem>>, vector<8x1xf32>
    %7 = arith.subf %3, %4 : vector<8x1xf32>
    %8 = arith.subf %5, %6 : vector<8x1xf32>
    %9 = arith.mulf %7, %8 : vector<8x1xf32>
    %cst = arith.constant 1.000000e+00 : f32
    %10 = vector.broadcast %cst : f32 to vector<8x1xf32>
    %11 = arith.subf %10, %9 : vector<8x1xf32>
    %cst_7 = arith.constant 0.000000e+00 : f32
    %12 = vector.broadcast %cst_7 : f32 to vector<8x1xf32>
    %13 = arith.maximumf %11, %12 : vector<8x1xf32>
    %c0_8 = arith.constant 0 : index
    %c0_9 = arith.constant 0 : index
    %14 = vector.load %arg7[%c0_8, %c0_9] : memref<1x1xf32, #tpu.memory_space<vmem>>, vector<1x1xf32>
    %15 = vector.shape_cast %13 : vector<8x1xf32> to vector<1x8x1xf32>
    %cst_10 = arith.constant dense<0.000000e+00> : vector<1xf32>
    %16 = vector.multi_reduction <add>, %15, %cst_10 [1, 2] : vector<1x8x1xf32> to vector<1xf32>
    %17 = vector.shape_cast %16 : vector<1xf32> to vector<1x1x1xf32>
    %18 = vector.extract %17[0, 0, 0] : f32 from vector<1x1x1xf32>
    %19 = vector.broadcast %18 : f32 to vector<1x1xf32>
    %20 = arith.addf %14, %19 : vector<1x1xf32>
    %c0_11 = arith.constant 0 : index
    %c0_12 = arith.constant 0 : index
    %21 = vector.load %arg7[%c0_11, %c0_12] : memref<1x1xf32, #tpu.memory_space<vmem>>, vector<1x1xf32>
    tpu.vector_store %arg7[%c0_11, %c0_12], %20 {strides = array<i32>} : memref<1x1xf32, #tpu.memory_space<vmem>>, vector<1x1xf32>,
    %c0_i32_13 = arith.constant 0 : i32
    %22 = arith.cmpi eq, %arg1, %c0_i32_13 : i32
    %23 = arith.extui %22 : i1 to i32
    %c0_i32_14 = arith.constant 0 : i32
    %24 = arith.cmpi ne, %23, %c0_i32_14 : i32
    scf.if %24 {
      %c0_15 = arith.constant 0 : index
      %c0_16 = arith.constant 0 : index
      %25 = vector.load %arg7[%c0_15, %c0_16] : memref<1x1xf32, #tpu.memory_space<vmem>>, vector<1x1xf32>
      %26 = vector.shape_cast %25 : vector<1x1xf32> to vector<1x1xf32>
      %27 = vector.broadcast %26 : vector<1x1xf32> to vector<8x128xf32>
      %c0_17 = arith.constant 0 : index
      %c0_18 = arith.constant 0 : index
      %28 = vector.load %arg6[%c0_17, %c0_18] : memref<8x128xf32, #tpu.memory_space<vmem>>, vector<8x128xf32>
      tpu.vector_store %arg6[%c0_17, %c0_18], %27 {strides = array<i32>} : memref<8x128xf32, #tpu.memory_space<vmem>>, vector<8x128xf32>,
    } else {
    }
    return
  }
  func.func @transform_0(%arg0: i32, %arg1: i32) -> (i32, i32) {
    %c1_i32 = arith.constant 1 : i32
    %0 = arith.muli %arg0, %c1_i32 : i32
    %1 = arith.addi %0, %arg1 : i32
    %c0_i32 = arith.constant 0 : i32
    %2 = arith.minsi %1, %c0_i32 : i32
    %c0_i32_0 = arith.constant 0 : i32
    %c0_i32_1 = arith.constant 0 : i32
    return %2, %c0_i32_0 : i32, i32
  }
  func.func @transform_1(%arg0: i32, %arg1: i32) -> (i32, i32) {
    %c1_i32 = arith.constant 1 : i32
    %0 = arith.muli %arg0, %c1_i32 : i32
    %1 = arith.addi %0, %arg1 : i32
    %c0_i32 = arith.constant 0 : i32
    %2 = arith.minsi %1, %c0_i32 : i32
    %c0_i32_0 = arith.constant 0 : i32
    %c0_i32_1 = arith.constant 0 : i32
    return %2, %c0_i32_0 : i32, i32
  }
  func.func @transform_2(%arg0: i32, %arg1: i32) -> (i32, i32) {
    %c1_i32 = arith.constant 1 : i32
    %0 = arith.muli %arg0, %c1_i32 : i32
    %1 = arith.addi %0, %arg1 : i32
    %c0_i32 = arith.constant 0 : i32
    %2 = arith.minsi %1, %c0_i32 : i32
    %c0_i32_0 = arith.constant 0 : i32
    %c0_i32_1 = arith.constant 0 : i32
    return %2, %c0_i32_0 : i32, i32
  }
  func.func @transform_3(%arg0: i32, %arg1: i32) -> (i32, i32) {
    %c1_i32 = arith.constant 1 : i32
    %0 = arith.muli %arg0, %c1_i32 : i32
    %1 = arith.addi %0, %arg1 : i32
    %c0_i32 = arith.constant 0 : i32
    %2 = arith.minsi %1, %c0_i32 : i32
    %c0_i32_0 = arith.constant 0 : i32
    %c0_i32_1 = arith.constant 0 : i32
    return %2, %c0_i32_0 : i32, i32
  }
  func.func @transform_4(%arg0: i32, %arg1: i32) -> (i32, i32) {
    %c0_i32 = arith.constant 0 : i32
    %c0_i32_0 = arith.constant 0 : i32
    return %arg0, %c0_i32 : i32, i32
  }
}

</mosaic_0001>

<bundles_post_ra>
// kernel: tpu_custom_call.1
= control target key start
LH: loop header
LB: loop body
LE: loop exit
PB: predicated region body
PF: predicated region fallthrough
CT: control target
= control target key end

     0   :  { %9 = vsyncpa [#allocation4], 0  ;;  %s342_s0 = inlined_call_operand.hbm [shape: f32[8,32], index: 0, kind: input, shape index: {}]   ;;  %s343_s1 = inlined_call_operand.hbm [shape: f32[8,32], index: 1, kind: input, shape index: {}]   ;;  %s344_s2 = inlined_call_operand.hbm [shape: f32[8,32], index: 2, kind: input, shape index: {}]   ;;  %s345_s3 = inlined_call_operand.hbm [shape: f32[8,32], index: 3, kind: input, shape index: {}]   ;;  %s346_s4 = inlined_call_operand.hbm [shape: f32[8,128], index: 4, kind: output, shape index: {}]  }
   0x1   :  { %10 = vsyncpa [#allocation7], 0 }
   0x2   :  { %11 = vsyncpa [#allocation10], 0 }
   0x3   :  { %12 = vsyncpa [#allocation5], 0  ;;  %s292_s15 = smov [#allocation6]   ;;  %s293_s17 = smov [#allocation3]  }
   0x4   :  { %s39_s16 = sshll.u32 %s292_s15, 4  ;;  %s24_s18 = sshll.u32 %s293_s17, 4  ;;  %s40_s16 = int_to_ptr.vmem [resolvable:$true] %s39_s16  ;;  %s25_s18 = int_to_ptr.vmem [resolvable:$true] %s24_s18 }
   0x5   :  { %s192_s19 = scalar_lea.vmem %s40_s16, 128  ;;  %p197_p1 = scmp.lt.s32.totalorder %s40_s16, %s40_s16 }
   0x6   :  { %p193_p0 = scmp.ne.s32.totalorder %s40_s16, %s192_s19  ;;  %p198_p2 = scmp.lt.s32.totalorder %s192_s19, %s192_s19 }
   0x8   :  { %p199_p3 = por %p198_p2, %p197_p1 }
   0xa   :  { %p200_p4 = pnand %p199_p3, %p193_p0 }
   0xc   :  { %203 = shalt.err (!%p200_p4)
}
   0xd   :  { %42 = dma.hbm_to_vmem [thread:$0]  %s343_s1, 128, %s40_s16, [#allocation7]  }
   0xe   :  { %s212_s22 = scalar_lea.vmem %s25_s18, 128  ;;  %p217_p6 = scmp.lt.s32.totalorder %s25_s18, %s25_s18 }
   0xf   :  { %p213_p5 = scmp.ne.s32.totalorder %s25_s18, %s212_s22  ;;  %p218_p7 = scmp.lt.s32.totalorder %s212_s22, %s212_s22 }
  0x11   :  { %p219_p8 = por %p218_p7, %p217_p6 }
  0x13   :  { %p220_p9 = pnand %p219_p8, %p213_p5 }
  0x15   :  { %223 = shalt.err (!%p220_p9)
}
  0x16   :  { %27 = dma.hbm_to_vmem [thread:$0]  %s342_s0, 128, %s25_s18, [#allocation4]  }
  0x17   :  { %s294_s25 = smov [#allocation8]   ;;  %s295_s27 = smov [#allocation9]  }
  0x18   :  { %s54_s26 = sshll.u32 %s294_s25, 4  ;;  %s69_s28 = sshll.u32 %s295_s27, 4  ;;  %s55_s26 = int_to_ptr.vmem [resolvable:$true] %s54_s26  ;;  %s70_s28 = int_to_ptr.vmem [resolvable:$true] %s69_s28 }
  0x19   :  { %s232_s29 = scalar_lea.vmem %s55_s26, 128  ;;  %p237_p11 = scmp.lt.s32.totalorder %s55_s26, %s55_s26 }
  0x1a   :  { %p233_p10 = scmp.ne.s32.totalorder %s55_s26, %s232_s29  ;;  %p238_p12 = scmp.lt.s32.totalorder %s232_s29, %s232_s29 }
  0x1c   :  { %p239_p13 = por %p238_p12, %p237_p11 }
  0x1e   :  { %p240_p0 = pnand %p239_p13, %p233_p10 }
  0x20   :  { %243 = shalt.err (!%p240_p0)
}
  0x21   :  { %57 = dma.hbm_to_vmem [thread:$0]  %s344_s2, 128, %s55_s26, [#allocation7]  }
  0x22   :  { %s252_s5 = scalar_lea.vmem %s70_s28, 128  ;;  %p257_p2 = scmp.lt.s32.totalorder %s70_s28, %s70_s28 }
  0x23   :  { %p253_p1 = scmp.ne.s32.totalorder %s70_s28, %s252_s5  ;;  %p258_p3 = scmp.lt.s32.totalorder %s252_s5, %s252_s5 }
  0x25   :  { %p259_p4 = por %p258_p3, %p257_p2 }
  0x27   :  { %p260_p5 = pnand %p259_p4, %p253_p1 }
  0x29   :  { %263 = shalt.err (!%p260_p5)
}
  0x2a   :  { %72 = dma.hbm_to_vmem [thread:$0]  %s345_s3, 128, %s70_s28, [#allocation10]  }
  0x2b   :  { %284 = dma.done.wait [#allocation4], 128  }
  0x2c   :  { %285 = vsyncadd [#allocation4], 4294967168 }
  0x2d   :  { %286 = dma.done.wait [#allocation7], 256  }
  0x2e   :  { %287 = vsyncadd [#allocation7], 4294967040 }
  0x2f   :  { %288 = dma.done.wait [#allocation10], 128  }
  0x30   :  { %289 = vsyncadd [#allocation10], 4294967168  ;;  %v103_v0 = vld [vmem:[#allocation3] sm:$0xff]  ;;  %v104_v1 = vld [vmem:[#allocation6] sm:$0xff]  ;;  %s296_s2 = smov 112   ;;  %vm117_vm0 = vcmask 7168  }
  0x31   :  { %v105_v2 = vld [vmem:[#allocation8] sm:$0xff]  ;;  %v106_v3 = vld [vmem:[#allocation9] sm:$0xff]  ;;  %v107_v4 = vsub.f32 %v103_v0, %v104_v1  ;;  %vm101_vm1 = vcmask 0   ;;  %v297_v11 = vmov 0.0   ;;  %v298_v12 = vmov 0   ;;  %s299_s7 = smov [#allocation11]  }
  0x32   :  { %v108_v5 = vsub.f32 %v105_v2, %v106_v3  ;;  %102 = vst.msk [vmem:[#allocation2] sm:$0x1] %vm101_vm1, %v297_v11  ;;  %182 = vset.pattern.permute.xlu1 %v298_v12  ;;  %183 = vset.pattern.permute.xlu0 %v298_v12  ;;  %s152_s8 = sshll.u32 %s299_s7, 4  ;;  %s153_s8 = int_to_ptr.vmem [resolvable:$true] %s152_s8 }
  0x33   :  { %s264_s9 = scalar_lea.vmem %s153_s8, 128  ;;  %p269_p7 = scmp.lt.s32.totalorder %s153_s8, %s153_s8 }
  0x34   :  { %v109_v6 = vmul.f32 %v108_v5, %v107_v4  ;;  %p265_p6 = scmp.ne.s32.totalorder %s153_s8, %s264_s9  ;;  %p270_p8 = scmp.lt.s32.totalorder %s264_s9, %s264_s9 }
  0x36   :  { %v110_v7 = vsub.f32 1.0, %v109_v6  ;;  %p271_p9 = por %p270_p8, %p269_p7 }
  0x38   :  { %v111_v8 = vmax.f32 %v110_v7, 0.0  ;;  %p272_p10 = pnand %p271_p9, %p265_p6 }
  0x39   :  { %v112_v20 = vld [vmem:[#allocation2] sm:$0x1] }
  0x3a   :  { %114 = vrot.lane.b32.xlu0 %v111_v8, %s296_s2 }
  0xac   :  { %v115_v9 = vpop.permute.xlu0 %114 }
  0xad   :  { %v118_v10 = vsel %vm117_vm0, %v115_v9, 0.0 }
  0xae   :  { %119 = vadd.xlane.f32.xlu0 %v118_v10 }
 0x137   :  { %v120_v13 = vpop.xlane.xlu0 %119 }
 0x138   :  { %v121_v14 = vrot.slane %v120_v13, 4 }
 0x13a   :  { %v122_v15 = vadd.f32 %v121_v14, %v120_v13 }
 0x13c   :  { %v123_v16 = vrot.slane %v122_v15, 2 }
 0x13e   :  { %v124_v17 = vadd.f32 %v123_v16, %v122_v15 }
 0x140   :  { %v125_v18 = vrot.slane %v124_v17, 1 }
 0x142   :  { %v126_v19 = vadd.f32 %v125_v18, %v124_v17 }
 0x144   :  { %172 = vpush %v126_v19 }
 0x175   :  { %s173_s3 = spop %172 }
 0x176   :  { %v128_v21 = vstv %s173_s3 }
 0x177   :  { %v129_v22 = vadd.f32 %v128_v21, %v112_v20 }
 0x179   :  { %131 = vst.msk [vmem:[#allocation2] sm:$0x1] %vm101_vm1, %v129_v22 }
 0x180   :  { %v171_v23 = vld [vmem:[#allocation2] ss:$0 sm:$0xff] }
 0x181   :  { %142 = vperm.xlu1 %182, %v171_v23  }
 0x1fc   :  { %v143_v24 = vpop.permute.xlu1 %142 }
 0x1fd   :  { %145 = vst [vmem:[#allocation11] sm:$0xff] %v143_v24 }
 0x1fe   :  { %275 = shalt.err (!%p272_p10)
}
 0x1ff   :  { %155 = dma.vmem_to_hbm [thread:$0]  %s153_s8, 128, %s346_s4, [#allocation5]  }
 0x200   :  { %290 = dma.done.wait [#allocation5], 128  }
 0x201   :  { %291 = vsyncadd [#allocation5], 4294967168 }
 0x202   :  { %159 = vsyncpa [#allocation4], 1 }
 0x203   :  { %160 = vsyncpa [#allocation7], 1 }
 0x204   :  { %161 = vsyncpa [#allocation10], 1 }
 0x205   :  { %162 = vsyncpa [#allocation5], 1 }

</bundles_post_ra>
